<compile_context>
chip_gen: v5e
topology: v5e:2x2
jax: 0.10.0
libtpu: 0.0.40
codegen_flags: <defaults>
</compile_context>

<pallas_src>
import functools

import jax
import jax.numpy as jnp
from jax.experimental import pallas as pl
from jax.experimental.pallas import tpu as pltpu


# ---------------------------------------------------------------------------
# Kernels
# ---------------------------------------------------------------------------
def ffn_kernel_resident(x_ref, wfc_ref, bfc_ref, wproj_ref, bproj_ref, o_ref):
    """Weights fully resident in VMEM; 1-D grid over row tiles.

    x_ref:     (tm, D)   compute-dtype row tile
    wfc_ref:   (D, H)    c_fc weight (resident, transposed vs. torch)
    bfc_ref:   (1, H)    f32 c_fc bias
    wproj_ref: (H, D)    c_proj weight (resident, transposed vs. torch)
    bproj_ref: (1, D)    f32 c_proj bias
    o_ref:     (tm, D)   output tile
    """
    h = jnp.dot(x_ref[...], wfc_ref[...], preferred_element_type=jnp.float32)
    h = h + bfc_ref[...]
    # QuickGELU in f32 (EUP): x * sigmoid(1.702 * x).
    h = h * jax.nn.sigmoid(1.702 * h)
    out = jnp.dot(h.astype(wproj_ref.dtype), wproj_ref[...],
                  preferred_element_type=jnp.float32)
    o_ref[...] = (out + bproj_ref[...]).astype(o_ref.dtype)


def ffn_kernel_streaming(x_ref, wfc_ref, bfc_ref, wproj_ref, bproj_ref, o_ref,
                         acc_ref):
    """Hidden dim tiled: 2-D grid (row tile, hidden tile); H axis is a reduction.

    acc_ref: (tm, D) f32 accumulator scratch (init/finalize via pl.when).
    """
    k = pl.program_id(1)

    @pl.when(k == 0)
    def _():
        acc_ref[...] = jnp.zeros_like(acc_ref)

    h = jnp.dot(x_ref[...], wfc_ref[...], preferred_element_type=jnp.float32)
    h = h + bfc_ref[...]
    h = h * jax.nn.sigmoid(1.702 * h)
    acc_ref[...] += jnp.dot(h.astype(wproj_ref.dtype), wproj_ref[...],
                            preferred_element_type=jnp.float32)

    @pl.when(k == pl.num_programs(1) - 1)
    def _():
        o_ref[...] = (acc_ref[...] + bproj_ref[...]).astype(o_ref.dtype)


# ---------------------------------------------------------------------------
# Tile / budget selection helpers (all static Python, evaluated at trace time)
# ---------------------------------------------------------------------------
def _round_up(x, m):
    return ((x + m - 1) // m) * m


def _device_kind():
    try:
        return jax.devices()[0].device_kind.lower()
    except Exception:
        return ""


def _vmem_capacity_bytes():
    """Queried VMEM capacity with a conservative fallback."""
    try:
        cap = int(pltpu.get_tpu_info().vmem_capacity_bytes)
        if cap > 0:
            return cap
    except Exception:
        pass
    kind = _device_kind()
    if "v5" in kind or "v6" in kind:
        return 128 << 20
    return 64 << 20  # v7x / unknown: assume the smallest budget


def _row_tile_target(kind):
    if "v5" in kind:
        return 256    # ~240 flops/byte suffices; spend VMEM on weight buffering
    if "v6" in kind:
        return 1024   # ~640 flops/byte needed to be MXU-bound on v6e
    return 512        # v7x (~310 flops/byte) and unknown chips


def _resident_row_tile(tm0, D, H, budget, in_b, out_b, w_b):
    """Largest row tile <= tm0 for which both weights + a row tile fit the
    VMEM budget (weights counted double-buffered, conservatively). 0 = no fit."""
    weights = 2 * (2 * D * H * w_b) + 2 * 8 * (H + D) * 4
    t = tm0
    while True:
        per_tile = 2 * t * D * (in_b + out_b) + t * H * 6 + t * D * 8
        if weights + per_tile <= budget:
            return t
        if t <= 16:
            return 0
        t = max(16, _round_up(t // 2, 16))


def _streaming_tiles(tm, D, H, budget, in_b, out_b, w_b, n_wbuf):
    """(tm, th) for the streaming path, sized from the VMEM budget."""
    H_cap = _round_up(H, 128)
    while True:
        fixed = (2 * tm * D * (in_b + out_b)   # x / out double buffers
                 + 2 * tm * D * 4              # f32 accumulator + result staging
                 + 2 * 8 * D * 4)              # c_proj bias buffers
        per_th = (n_wbuf * 2 * D * w_b         # (D,th)+(th,D) weight tile buffers
                  + 2 * 8 * 4                  # c_fc bias tile buffers
                  + tm * 6)                    # f32 + bf16 intermediate activation
        th = ((budget - fixed) // per_th) // 128 * 128
        th = min(th, H_cap)
        if th >= 256 or tm <= 128 or th >= H_cap:
            return tm, max(int(th), 128)
        tm = max(128, _round_up(tm // 2, 16))


# ---------------------------------------------------------------------------
# Wrapper
# ---------------------------------------------------------------------------
@functools.partial(jax.jit, static_argnames=("compute_dtype",))
def ffn_pallas(x, w_fc, b_fc, w_proj, b_proj, *, compute_dtype=jnp.bfloat16):
    """x: (B, S, D). w_fc: (D, H). b_fc: (H,). w_proj: (H, D). b_proj: (D,)."""
    B, S, D = x.shape
    H = w_fc.shape[1]
    M = B * S

    kind = _device_kind()
    vmem_cap = _vmem_capacity_bytes()
    budget = int(0.75 * vmem_cap)  # leave headroom for Mosaic internal scratch

    in_b = jnp.dtype(compute_dtype).itemsize
    w_b = in_b
    out_b = jnp.dtype(x.dtype).itemsize

    # --- tile selection -----------------------------------------------------
    tm0 = min(_row_tile_target(kind), _round_up(M, 16))
    n_wbuf = 3 if "v5" in kind else 2

    tm_res = _resident_row_tile(tm0, D, H, budget, in_b, out_b, w_b)
    if tm_res > 0:
        resident, tm, th = True, tm_res, H
    else:
        resident = False
        tm, th = _streaming_tiles(tm0, D, H, budget, in_b, out_b, w_b, n_wbuf)

    M_pad = _round_up(M, tm)
    # Ensure >=2 row tiles when there is enough work so the "parallel" axis can
    # shard across TensorCores (v7x megacore).
    if M_pad // tm == 1 and tm >= 512:
        tm = _round_up(tm // 2, 16)
        M_pad = _round_up(M, tm)
    grid_m = M_pad // tm

    H_pad = H if resident else _round_up(H, th)
    n_th = 1 if resident else H_pad // th

    # --- operand prep (casts are no-ops if params were prepared already) -----
    x2 = x.reshape(M, D)
    if M_pad != M:
        x2 = jnp.pad(x2, ((0, M_pad - M), (0, 0)))
    x_c = x2.astype(compute_dtype)
    wfc_c = w_fc.astype(compute_dtype)
    wproj_c = w_proj.astype(compute_dtype)
    bfc2 = b_fc.reshape(1, H).astype(jnp.float32)
    bproj2 = b_proj.reshape(1, D).astype(jnp.float32)
    if H_pad != H:
        # Exact: quickgelu(0) = 0 and the padded c_proj rows are zero.
        wfc_c = jnp.pad(wfc_c, ((0, 0), (0, H_pad - H)))
        bfc2 = jnp.pad(bfc2, ((0, 0), (0, H_pad - H)))
        wproj_c = jnp.pad(wproj_c, ((0, H_pad - H), (0, 0)))

    # --- cost estimate (weights streamed grid_m times unless resident) -------
    weight_passes = 1 if resident else grid_m
    cost = pl.CostEstimate(
        flops=4 * M_pad * D * H_pad,
        transcendentals=M_pad * H_pad,
        bytes_accessed=(M_pad * D * (in_b + out_b)
                        + weight_passes * 2 * D * H_pad * w_b
                        + weight_passes * (H_pad + D) * 4),
    )

    vmem_limit = max(32 << 20, int(0.85 * vmem_cap))

    if resident:
        grid = (grid_m,)
        in_specs = [
            pl.BlockSpec((tm, D), lambda i: (i, 0)),        # x row tile
            pl.BlockSpec((D, H_pad), lambda i: (0, 0)),     # c_fc weight (resident)
            pl.BlockSpec((1, H_pad), lambda i: (0, 0)),     # c_fc bias
            pl.BlockSpec((H_pad, D), lambda i: (0, 0)),     # c_proj weight (resident)
            pl.BlockSpec((1, D), lambda i: (0, 0)),         # c_proj bias
        ]
        out_specs = pl.BlockSpec((tm, D), lambda i: (i, 0))
        scratch_shapes = []
        kernel = ffn_kernel_resident
        dim_sem = ("parallel",)
    else:
        grid = (grid_m, n_th)
        # Deeper weight-tile buffering on v5e (spare VMEM, lower HBM BW).
        w_mode = pl.Buffered(3) if (n_wbuf == 3 and n_th >= 3) else None
        in_specs = [
            pl.BlockSpec((tm, D), lambda i, k: (i, 0)),                         # x
            pl.BlockSpec((D, th), lambda i, k: (0, k), pipeline_mode=w_mode),   # c_fc W
            pl.BlockSpec((1, th), lambda i, k: (0, k)),                         # c_fc b
            pl.BlockSpec((th, D), lambda i, k: (k, 0), pipeline_mode=w_mode),   # c_proj W
            pl.BlockSpec((1, D), lambda i, k: (0, 0)),                          # c_proj b
        ]
        out_specs = pl.BlockSpec((tm, D), lambda i, k: (i, 0))
        scratch_shapes = [pltpu.VMEM((tm, D), jnp.float32)]
        kernel = ffn_kernel_streaming
        dim_sem = ("parallel", "arbitrary")

    out = pl.pallas_call(
        kernel,
        out_shape=jax.ShapeDtypeStruct((M_pad, D), x.dtype),
        grid_spec=pltpu.PrefetchScalarGridSpec(
            num_scalar_prefetch=0,
            grid=grid,
            in_specs=in_specs,
            out_specs=out_specs,
            scratch_shapes=scratch_shapes,
        ),
        compiler_params=pltpu.CompilerParams(
            dimension_semantics=dim_sem,
            vmem_limit_bytes=vmem_limit,
        ),
        cost_estimate=cost,
    )(x_c, wfc_c, bfc2, wproj_c, bproj2)

    return out[:M].reshape(B, S, D)


def prepare_ffn_params(w_fc, b_fc, w_proj, b_proj, compute_dtype=jnp.bfloat16):
    """Cast weights to the compute dtype ONCE (hoists per-call casts out of the
    hot path; biases stay f32)."""
    return (w_fc.astype(compute_dtype), b_fc.astype(jnp.float32),
            w_proj.astype(compute_dtype), b_proj.astype(jnp.float32))


# ---------------------------------------------------------------------------
# Reference + init
# ---------------------------------------------------------------------------
def ffn_reference(x, w_fc, b_fc, w_proj, b_proj):
    """Pure-JAX f32 reference matching the PyTorch module semantics."""
    h = x @ w_fc + b_fc
    h = h * jax.nn.sigmoid(1.702 * h)
    return h @ w_proj + b_proj


def init_ffn_params(key, embedding_dim):
    """Deterministic parameter init (nn.Linear shapes, stored transposed)."""
    hidden_dim = embedding_dim * 4
    k1, k2, k3, k4 = jax.random.split(key, 4)
    bound_fc = 1.0 / jnp.sqrt(embedding_dim)
    bound_proj = 1.0 / jnp.sqrt(hidden_dim)
    w_fc = jax.random.uniform(k1, (embedding_dim, hidden_dim), jnp.float32,
                              -bound_fc, bound_fc)
    b_fc = jax.random.uniform(k2, (hidden_dim,), jnp.float32,
                              -bound_fc, bound_fc)
    w_proj = jax.random.uniform(k3, (hidden_dim, embedding_dim), jnp.float32,
                                -bound_proj, bound_proj)
    b_proj = jax.random.uniform(k4, (embedding_dim,), jnp.float32,
                                -bound_proj, bound_proj)
    return w_fc, b_fc, w_proj, b_proj


if __name__ == "__main__":
    batch, seq_len, embedding_dim = 2, 8, 32

    key = jax.random.PRNGKey(0)
    kx, kp = jax.random.split(key)
    x = jax.random.normal(kx, (batch, seq_len, embedding_dim), jnp.float32)
    w_fc, b_fc, w_proj, b_proj = init_ffn_params(kp, embedding_dim)

    # Prepare (cast) weights once outside the hot path.
    params_bf16 = prepare_ffn_params(w_fc, b_fc, w_proj, b_proj)

    out = ffn_pallas(x, *params_bf16)
    out = jax.block_until_ready(out)

    ref = ffn_reference(x, w_fc, b_fc, w_proj, b_proj)
    assert out.shape == (batch, seq_len, embedding_dim)
    # bf16 matmul operands (f32 accumulate) -> loosened tolerance vs f32 ref.
    assert jnp.allclose(out, ref, atol=3e-2, rtol=3e-2), "mismatch vs reference"

    print("KERNEL_OK")
</pallas_src>

<mosaic_0001>
module attributes {stable_mosaic.version = 11 : i64} {
  func.func @ffn_kernel_resident(%arg0: i32, %arg1: memref<16x32xbf16, #tpu.memory_space<vmem>>, %arg2: memref<32x128xbf16, #tpu.memory_space<vmem>>, %arg3: memref<1x128xf32, #tpu.memory_space<vmem>>, %arg4: memref<128x32xbf16, #tpu.memory_space<vmem>>, %arg5: memref<1x32xf32, #tpu.memory_space<vmem>>, %arg6: memref<16x32xf32, #tpu.memory_space<vmem>>) attributes {dimension_semantics = [#tpu.dimension_semantics<parallel>], iteration_bounds = array<i64: 1>, scalar_prefetch = 0 : i64, scratch_operands = 0 : i64, tpu.core_type = #tpu.core_type<tc>, window_params = [{transform_indices = @transform_0, window_bounds = array<i64: 16, 32>}, {pipeline_mode = #tpu.pipeline_mode<synchronous>, transform_indices = @transform_1, window_bounds = array<i64: 32, 128>}, {pipeline_mode = #tpu.pipeline_mode<synchronous>, transform_indices = @transform_2, window_bounds = array<i64: 1, 128>}, {pipeline_mode = #tpu.pipeline_mode<synchronous>, transform_indices = @transform_3, window_bounds = array<i64: 128, 32>}, {pipeline_mode = #tpu.pipeline_mode<synchronous>, transform_indices = @transform_4, window_bounds = array<i64: 1, 32>}, {transform_indices = @transform_5, window_bounds = array<i64: 16, 32>}]} {
    %c0 = arith.constant 0 : index
    %c0_0 = arith.constant 0 : index
    %0 = vector.load %arg1[%c0, %c0_0] : memref<16x32xbf16, #tpu.memory_space<vmem>>, vector<16x32xbf16>
    %c0_1 = arith.constant 0 : index
    %c0_2 = arith.constant 0 : index
    %1 = vector.load %arg2[%c0_1, %c0_2] : memref<32x128xbf16, #tpu.memory_space<vmem>>, vector<32x128xbf16>
    %cst = arith.constant dense<0.000000e+00> : vector<16x128xf32>
    %2 = tpu.matmul %0, %1, %cst {dimension_numbers = #tpu.dot_dimension_numbers<[1], [0], [0], [1], [0, 0, 1, 1], [], []>} : vector<16x32xbf16>, vector<32x128xbf16>, vector<16x128xf32> -> vector<16x128xf32>
    %c0_3 = arith.constant 0 : index
    %c0_4 = arith.constant 0 : index
    %3 = vector.load %arg3[%c0_3, %c0_4] : memref<1x128xf32, #tpu.memory_space<vmem>>, vector<1x128xf32>
    %4 = vector.broadcast %3 : vector<1x128xf32> to vector<16x128xf32>
    %5 = arith.addf %2, %4 : vector<16x128xf32>
    %cst_5 = arith.constant 1.702000e+00 : f32
    %6 = vector.broadcast %cst_5 : f32 to vector<16x128xf32>
    %7 = arith.mulf %6, %5 : vector<16x128xf32>
    %8 = arith.negf %7 : vector<16x128xf32>
    %9 = math.exp %8 : vector<16x128xf32>
    %cst_6 = arith.constant 1.000000e+00 : f32
    %10 = vector.broadcast %cst_6 : f32 to vector<16x128xf32>
    %11 = arith.addf %10, %9 : vector<16x128xf32>
    %12 = arith.divf %10, %11 : vector<16x128xf32>
    %13 = arith.mulf %5, %12 : vector<16x128xf32>
    %14 = arith.truncf %13 : vector<16x128xf32> to vector<16x128xbf16>
    %c0_7 = arith.constant 0 : index
    %c0_8 = arith.constant 0 : index
    %15 = vector.load %arg4[%c0_7, %c0_8] : memref<128x32xbf16, #tpu.memory_space<vmem>>, vector<128x32xbf16>
    %cst_9 = arith.constant dense<0.000000e+00> : vector<16x32xf32>
    %16 = tpu.matmul %14, %15, %cst_9 {dimension_numbers = #tpu.dot_dimension_numbers<[1], [0], [0], [1], [0, 0, 1, 1], [], []>} : vector<16x128xbf16>, vector<128x32xbf16>, vector<16x32xf32> -> vector<16x32xf32>
    %c0_10 = arith.constant 0 : index
    %c0_11 = arith.constant 0 : index
    %17 = vector.load %arg5[%c0_10, %c0_11] : memref<1x32xf32, #tpu.memory_space<vmem>>, vector<1x32xf32>
    %18 = vector.broadcast %17 : vector<1x32xf32> to vector<16x32xf32>
    %19 = arith.addf %16, %18 : vector<16x32xf32>
    %c0_12 = arith.constant 0 : index
    %c0_13 = arith.constant 0 : index
    %20 = vector.load %arg6[%c0_12, %c0_13] : memref<16x32xf32, #tpu.memory_space<vmem>>, vector<16x32xf32>
    tpu.vector_store %arg6[%c0_12, %c0_13], %19 {strides = array<i32>} : memref<16x32xf32, #tpu.memory_space<vmem>>, vector<16x32xf32>,
    return
  }
  func.func @transform_0(%arg0: i32) -> (i32, i32) {
    %c0_i32 = arith.constant 0 : i32
    %c0_i32_0 = arith.constant 0 : i32
    return %arg0, %c0_i32 : i32, i32
  }
  func.func @transform_1(%arg0: i32) -> (i32, i32) {
    %c0_i32 = arith.constant 0 : i32
    %c0_i32_0 = arith.constant 0 : i32
    %c0_i32_1 = arith.constant 0 : i32
    return %c0_i32, %c0_i32_0 : i32, i32
  }
  func.func @transform_2(%arg0: i32) -> (i32, i32) {
    %c0_i32 = arith.constant 0 : i32
    %c0_i32_0 = arith.constant 0 : i32
    %c0_i32_1 = arith.constant 0 : i32
    return %c0_i32, %c0_i32_0 : i32, i32
  }
  func.func @transform_3(%arg0: i32) -> (i32, i32) {
    %c0_i32 = arith.constant 0 : i32
    %c0_i32_0 = arith.constant 0 : i32
    %c0_i32_1 = arith.constant 0 : i32
    return %c0_i32, %c0_i32_0 : i32, i32
  }
  func.func @transform_4(%arg0: i32) -> (i32, i32) {
    %c0_i32 = arith.constant 0 : i32
    %c0_i32_0 = arith.constant 0 : i32
    %c0_i32_1 = arith.constant 0 : i32
    return %c0_i32, %c0_i32_0 : i32, i32
  }
  func.func @transform_5(%arg0: i32) -> (i32, i32) {
    %c0_i32 = arith.constant 0 : i32
    %c0_i32_0 = arith.constant 0 : i32
    return %arg0, %c0_i32 : i32, i32
  }
}

</mosaic_0001>

<bundles_post_ra>
// kernel: ffn_pallas.1
= control target key start
LH: loop header
LB: loop body
LE: loop exit
PB: predicated region body
PF: predicated region fallthrough
CT: control target
= control target key end

     0   :  { %s387_s0 = inlined_call_operand.vmem [shape: bf16[16,32], index: 0, kind: input, shape index: {}]   ;;  %s388_s1 = inlined_call_operand.vmem [shape: bf16[32,128], index: 1, kind: input, shape index: {}]   ;;  %s389_s2 = inlined_call_operand.vmem [shape: f32[1,128], index: 2, kind: input, shape index: {}]   ;;  %s390_s3 = inlined_call_operand.vmem [shape: bf16[128,32], index: 3, kind: input, shape index: {}]   ;;  %s391_s4 = inlined_call_operand.vmem [shape: f32[1,32], index: 4, kind: input, shape index: {}]   ;;  %s392_s5 = inlined_call_operand.hbm [shape: f32[16,32], index: 5, kind: output, shape index: {}]  }
   0x1   :  { %v261_v0 = vld [vmem:[%s388_s1 + $0x8] sm:$0xff]  ;;  %v260_v1 = vld [vmem:[%s388_s1] sm:$0xff] }
   0x2   :  { %59 = vmatpush.bf16.msra.mxu0 %v261_v0 }
   0x3   :  { %10 = vsyncpa [#allocation3], 0  ;;  %v259_v2 = vld [vmem:[%s387_s0] sm:$0xff]  ;;  %vm49_vm0 = vcmask 261120   ;;  %v269_v3 = vld [vmem:[%s390_s3 + $0x38] sm:$0xff]  ;;  %s309_s15 = smov [#allocation2]  }
   0x4   :  { %178 = vmatpush.bf16.msra.mxu1 %v269_v3  ;;  %v268_v4 = vld [vmem:[%s390_s3 + $0x30] sm:$0xff]  ;;  %v267_v5 = vld [vmem:[%s390_s3 + $0x28] sm:$0xff]  ;;  %v266_v6 = vld [vmem:[%s390_s3 + $0x20] sm:$0xff]  ;;  %s198_s16 = sshll.u32 %s309_s15, 4  ;;  %s200_s19 = sshll.u32 %s392_s5, 4  ;;  %s199_s16 = int_to_ptr.vmem [resolvable:$true] %s198_s16  ;;  %s201_s19 = int_to_ptr.hbm [resolvable:$true] %s200_s19 }
   0x5   :  { %v265_v7 = vld [vmem:[%s390_s3 + $0x18] sm:$0xff]  ;;  %v273_v8 = vld [vmem:[%s389_s2] ss:$0 sm:$0xff]  ;;  %v264_v10 = vld [vmem:[%s390_s3 + $0x10] sm:$0xff]  ;;  %s310_s20 = smov 128   ;;  %s311_s21 = smov 8  }
   0x6   :  { %60 = vmatpush.bf16.msra.mxu0 %v260_v1  ;;  %v263_v13 = vld [vmem:[%s390_s3 + $0x8] sm:$0xff]  ;;  %v262_v16 = vld [vmem:[%s390_s3] sm:$0xff] }
   0x7   :  { %v274_v47 = vld [vmem:[%s391_s4] ss:$0 sm:$0xff] }
   0x8   :  { %179 = vmatpush.bf16.msra.mxu1 %v268_v4 }
   0x9   :  { %224 = vmatmul.msk.bf16.vlgmr.msra.gmra.mxu0 %vm49_vm0, %v259_v2 }
   0xc   :  { %180 = vmatpush.bf16.msra.mxu1 %v267_v5 }
  0x10   :  { %181 = vmatpush.bf16.msra.mxu1 %v266_v6 }
  0x14   :  { %182 = vmatpush.bf16.msra.mxu1 %v265_v7 }
  0x18   :  { %183 = vmatpush.bf16.msra.mxu1 %v264_v10 }
  0x1c   :  { %184 = vmatpush.bf16.msra.mxu1 %v263_v13 }
  0x20   :  { %185 = vmatpush.bf16.msra.mxu1 %v262_v16 }
  0x86   :  { %v62_v9 = vpop.f32.mrf.mxu0 }
  0x87   :  { %v63_v11 = vadd.f32 %v273_v8, %v62_v9 }
  0x89   :  { %v225_v12 = vmul.f32 -1.702, %v63_v11 }
  0x8b   :  { %v71_v14 = vmul.f32 1.442695, %v225_v12 }
  0x8d   :  { %275 = vpow2.f32 %v71_v14 }
  0x8e   :  { %v64_v15 = vpop.f32.mrf.mxu0 }
  0x8f   :  { %v65_v17 = vadd.f32 %v273_v8, %v64_v15 }
  0x91   :  { %v226_v18 = vmul.f32 -1.702, %v65_v17 }
  0x93   :  { %v276_v19 = vpop.eup %275  ;;  %v73_v20 = vmul.f32 1.442695, %v226_v18 }
  0x94   :  { %v75_v21 = vadd.f32 1.0, %v276_v19 }
  0x95   :  { %277 = vpow2.f32 %v73_v20 }
  0x96   :  { %279 = vrcp.f32 %v75_v21  ;;  %v88_v31 = vand.u32 2147483648, %v75_v21  ;;  %vm82_vm2 = vweird.f32 %v75_v21  ;;  %v86_v32 = vand.u32 2147483647, %v75_v21 }
  0x98   :  { %v89_v38 = vor.u32 1.1754944e-38, %v88_v31  ;;  %vm87_vm5 = vcmp.eq.f32.partialorder %v86_v32, 8.507059e+37 }
  0x9b   :  { %v278_v22 = vpop.eup %277 }
  0x9c   :  { %v280_v23 = vpop.eup %279  ;;  %v76_v24 = vadd.f32 1.0, %v278_v22 }
  0x9d   :  { %v78_v25 = vmul.f32 %v280_v23, %v75_v21  ;;  %vm83_vm1 = vweird.f32 %v280_v23 }
  0x9e   :  { %281 = vrcp.f32 %v76_v24  ;;  %vm84_vm3 = vmor %vm82_vm2, %vm83_vm1  ;;  %v103_v34 = vand.u32 2147483648, %v76_v24  ;;  %v101_v37 = vand.u32 2147483647, %v76_v24  ;;  %vm97_vm6 = vweird.f32 %v76_v24 }
  0x9f   :  { %v79_v26 = vsub.f32 1.0, %v78_v25 }
  0xa0   :  { %v104_v41 = vor.u32 1.1754944e-38, %v103_v34  ;;  %vm102_vm8 = vcmp.eq.f32.partialorder %v101_v37, 8.507059e+37 }
  0xa1   :  { %v80_v27 = vmul.f32 %v280_v23, %v79_v26 }
  0xa3   :  { %v81_v29 = vadd.f32 %v280_v23, %v80_v27 }
  0xa4   :  { %v282_v28 = vpop.eup %281 }
  0xa5   :  { %v93_v30 = vmul.f32 %v282_v28, %v76_v24  ;;  %v85_v35 = vsel %vm84_vm3, %v280_v23, %v81_v29  ;;  %vm98_vm4 = vweird.f32 %v282_v28 }
  0xa6   :  { %v90_v40 = vsel %vm87_vm5, %v89_v38, %v85_v35  ;;  %vm99_vm7 = vmor %vm97_vm6, %vm98_vm4 }
  0xa7   :  { %v94_v33 = vsub.f32 1.0, %v93_v30  ;;  %v107_v44 = vmul.f32 %v90_v40, %v63_v11 }
  0xa9   :  { %v95_v36 = vmul.f32 %v282_v28, %v94_v33 }
  0xab   :  { %v96_v39 = vadd.f32 %v282_v28, %v95_v36 }
  0xad   :  { %v100_v42 = vsel %vm99_vm7, %v282_v28, %v96_v39 }
  0xae   :  { %v105_v43 = vsel %vm102_vm8, %v104_v41, %v100_v42 }
  0xaf   :  { %v108_v45 = vmul.f32 %v105_v43, %v65_v17 }
  0xb1   :  { %v109_v46 = vpack.c.bf16 %v108_v45, %v107_v44 }
  0xb3   :  { %186 = vmatmul.bf16.vlgmr.msra.gmra.mxu1 %v109_v46 }
 0x130   :  { %v187_v48 = vpop.f32.mrf.mxu1 }
 0x131   :  { %v188_v49 = vadd.f32 %v274_v47, %v187_v48 }
 0x133   :  { %192 = vst.msk [vmem:[#allocation2] sm:$0xff] %vm49_vm0, %v188_v49 }
 0x138   :  { %v189_v50 = vpop.f32.mrf.mxu1 }
 0x139   :  { %v190_v51 = vadd.f32 %v274_v47, %v189_v50 }
 0x13b   :  { %193 = vst.msk [vmem:[#allocation2 + $0x8] sm:$0xff] %vm49_vm0, %v190_v51 }
 0x13c   :  { %206 = dma.vmem_to_hbm [thread:$0]  %s199_s16, 256, %s201_s19, [#allocation3], %s310_s20, %s310_s20, %s311_s21  }
 0x13d   :  { %307 = dma.done.wait [#allocation3], 256  }
 0x13e   :  { %308 = vsyncadd [#allocation3], 4294967040 }
 0x13f   :  { %211 = vsyncpa [#allocation3], 1 }

</bundles_post_ra>
